<compile_context>
chip_gen: v6e
topology: v6e:2x2x1
jax: 0.10.0
libtpu: 0.0.40
codegen_flags: <defaults>
</compile_context>

<pallas_src>
import jax
import jax.numpy as jnp
from jax.experimental import pallas as pl
from jax.experimental.pallas import tpu as pltpu


def _para_loss_kernel(score_ref, labels_ref, out_ref, score_acc, lab_acc):
    """score_ref/labels_ref: (b_tile, C, hw_tile) VMEM blocks (caller dtypes).
    out_ref: (1, 8, 128) per-batch-tile loss block (scalar broadcast, lane dense).
    score_acc/lab_acc: (b_tile, C) f32 VMEM accumulators, resident across the HW axis.
    """
    h = pl.program_id(1)
    n_h = pl.num_programs(1)

    @pl.when(h == 0)
    def _init():
        score_acc[...] = jnp.zeros_like(score_acc)
        lab_acc[...] = jnp.zeros_like(lab_acc)

    s = score_ref[...].astype(jnp.float32)        # (b_tile, C, hw_tile)
    l = labels_ref[...].astype(jnp.float32)       # (b_tile, C, hw_tile)

    # entity mask: per-pixel sum over classes, broadcast back over classes.
    mask = jnp.sum(l, axis=1, keepdims=True)      # (b_tile, 1, hw_tile)

    # partial spatial reductions for this HW tile.
    score_acc[...] += jnp.sum(s * mask, axis=2)   # (b_tile, C)
    lab_acc[...] += jnp.sum(l, axis=2)            # (b_tile, C)

    @pl.when(h == n_h - 1)
    def _finalize():
        score_red = score_acc[...]                # (b_tile, C)
        lab_sum = lab_acc[...]                    # (b_tile, C)
        bt, c = score_red.shape

        # label = argmax over classes (first max on tie, matches torch.argmax).
        col = jax.lax.broadcasted_iota(jnp.int32, (bt, c), 1)
        maxv = jnp.max(lab_sum, axis=-1, keepdims=True)
        label_idx = jnp.min(jnp.where(lab_sum == maxv, col, c), axis=-1, keepdims=True)
        onehot = (col == label_idx).astype(jnp.float32)

        # softmax cross-entropy, summed over this batch tile (mean taken in wrapper).
        m = jnp.max(score_red, axis=-1, keepdims=True)
        lse = m + jnp.log(jnp.sum(jnp.exp(score_red - m), axis=-1, keepdims=True))
        picked = jnp.sum(score_red * onehot, axis=-1, keepdims=True)
        tile_loss = jnp.sum(lse - picked)         # scalar for this batch tile

        # One lane-dense store per batch tile (no masked width-1 stores).
        out_ref[...] = jnp.full(out_ref.shape, tile_loss, dtype=out_ref.dtype)


def _round_up(x, m):
    return -(-x // m) * m


def _sublane_multiple(dtype):
    # sub-32-bit dtypes pack along sublanes: f32 -> 8, bf16 -> 16, int8 -> 32
    return 8 * max(1, 4 // jnp.dtype(dtype).itemsize)


def _pick_b_tile(b, cap=8):
    """Largest divisor of b that still leaves >= 2 batch programs when b >= 2,
    so the 'parallel' grid axis actually splits across v7x's two TensorCores."""
    max_t = min(b, cap)
    if b >= 2:
        max_t = min(max_t, b // 2)
    for t in range(max_t, 0, -1):
        if b % t == 0:
            return t
    return 1


def _pick_hw_tile(hw, per_lane_bytes, vmem_input_budget=24 * 1024 * 1024):
    """Pick (hw_tile, padded_HW).

    per_lane_bytes: VMEM bytes per lane column for ONE pipeline buffer of BOTH
    inputs (dtype/sublane-padding aware). vmem_input_budget covers the full
    2-inputs x 2-pipeline-buffers working set (kept well under v7x's 64 MiB).
    Tiles are multiples of 128 lanes; HW is padded up (zero padding is exact).
    """
    hw_pad = _round_up(hw, 128)
    cap = max(128, (vmem_input_budget // (2 * per_lane_bytes)) // 128 * 128)
    target = min(cap, hw_pad)          # as large as budget / extent allow (>=512 when feasible)
    n_hw = -(-hw_pad // target)
    tile = _round_up(-(-hw_pad // n_hw), 128)   # rebalance so padding waste < 128/tile
    return tile, tile * n_hw


def para_loss_softmax(score, predicate_one_hot_labels, *, b_tile=None, hw_tile=None):
    """score, predicate_one_hot_labels: (B, C, H, W) -> scalar loss (soft=True branch).

    Dtypes are preserved: pass score as bf16 and labels as int8 (exact for 0/1
    one-hot) to minimize HBM traffic; the kernel casts to f32 internally.
    """
    B, C, H, W = score.shape
    HW = H * W

    score_flat = score.reshape(B, C, HW)
    labels_flat = predicate_one_hot_labels.reshape(B, C, HW)

    if b_tile is None:
        b_tile = _pick_b_tile(B)
    assert B % b_tile == 0, (B, b_tile)

    s_item = jnp.dtype(score_flat.dtype).itemsize
    l_item = jnp.dtype(labels_flat.dtype).itemsize
    # dtype-aware VMEM footprint per lane column (sublane padding of the C axis).
    per_lane_bytes = (b_tile * _round_up(C, _sublane_multiple(score_flat.dtype)) * s_item
                      + b_tile * _round_up(C, _sublane_multiple(labels_flat.dtype)) * l_item)

    if hw_tile is None:
        hw_tile, HW_pad = _pick_hw_tile(HW, per_lane_bytes)
    else:
        assert hw_tile % 128 == 0, hw_tile
        HW_pad = _round_up(HW, hw_tile)

    if HW_pad != HW:
        # Zero padding is exact: padded labels are zero, so the entity mask is zero
        # there (killing any padded score contribution) and the per-class label
        # counts are unchanged.
        pad = HW_pad - HW
        score_flat = jnp.pad(score_flat, ((0, 0), (0, 0), (0, pad)))
        labels_flat = jnp.pad(labels_flat, ((0, 0), (0, 0), (0, pad)))

    n_b = B // b_tile
    n_hw = HW_pad // hw_tile

    bytes_accessed = B * C * HW_pad * (s_item + l_item) + n_b * 8 * 128 * 4
    cost = pl.CostEstimate(
        flops=3 * B * C * HW_pad,      # mask-sum, s*mask, spatial reductions
        transcendentals=B * C,         # exp in the final softmax-CE
        bytes_accessed=bytes_accessed,
    )

    out = pl.pallas_call(
        _para_loss_kernel,
        out_shape=jax.ShapeDtypeStruct((n_b, 8, 128), jnp.float32),
        grid_spec=pltpu.PrefetchScalarGridSpec(
            num_scalar_prefetch=0,
            grid=(n_b, n_hw),                                   # HW reduction axis last
            in_specs=[
                pl.BlockSpec((b_tile, C, hw_tile), lambda b, h: (b, 0, h)),
                pl.BlockSpec((b_tile, C, hw_tile), lambda b, h: (b, 0, h)),
            ],
            out_specs=pl.BlockSpec((1, 8, 128), lambda b, h: (b, 0, 0)),
            scratch_shapes=[
                pltpu.VMEM((b_tile, C), jnp.float32),           # score_red accumulator
                pltpu.VMEM((b_tile, C), jnp.float32),           # label-sum accumulator
            ],
        ),
        compiler_params=pltpu.CompilerParams(
            dimension_semantics=("parallel", "arbitrary"),      # batch across TCs on v7x
            vmem_limit_bytes=48 * 1024 * 1024,                  # > scoped default, < v7x 64 MiB
        ),
        cost_estimate=cost,
    )(score_flat, labels_flat)

    # Each (8,128) output block holds its batch-tile loss sum broadcast; take one lane.
    return jnp.sum(out[:, 0, 0]) / jnp.float32(B)


def _reference(score, labels):
    # pure-JAX reference of the PyTorch soft=True branch
    mask = jnp.sum(labels, axis=1, keepdims=True)                 # (B,1,H,W)
    score_red = jnp.sum(score * mask, axis=(2, 3))                # (B,C)
    lab_sum = jnp.sum(labels, axis=(2, 3))                        # (B,C)
    label = jnp.argmax(lab_sum, axis=-1)                          # (B,)
    logz = jax.nn.logsumexp(score_red, axis=-1)
    picked = jnp.take_along_axis(score_red, label[:, None], axis=-1)[:, 0]
    return jnp.mean(logz - picked)


if __name__ == "__main__":
    key = jax.random.PRNGKey(0)
    B, C, H, W = 2, 4, 16, 16

    k1, k2, k3 = jax.random.split(key, 3)
    score = jax.random.normal(k1, (B, C, H, W), dtype=jnp.float32)

    # deterministic synthetic one-hot predicate labels: random class per pixel,
    # with a random "entity present" mask (zero vector where absent)
    cls = jax.random.randint(k2, (B, H, W), 0, C)
    present = (jax.random.uniform(k3, (B, H, W)) < 0.3).astype(jnp.float32)
    onehot = jax.nn.one_hot(cls, C, dtype=jnp.float32)            # (B,H,W,C)
    labels = jnp.transpose(onehot, (0, 3, 1, 2)) * present[:, None, :, :]  # (B,C,H,W)

    ref = _reference(score, labels)

    # 1) f32 inputs, auto tiling (single HW block at this size; n_b=2 -> parallel axis used)
    loss_f32 = para_loss_softmax(score, labels)
    # 2) forced multi-step HW reduction (exercises accumulator init/finalize path)
    loss_tiled = para_loss_softmax(score, labels, hw_tile=128)
    # 3) reduced-HBM-byte path: bf16 score + int8 labels (recommended caller dtypes)
    loss_lowp = para_loss_softmax(score.astype(jnp.bfloat16), labels.astype(jnp.int8))

    jax.block_until_ready((loss_f32, loss_tiled, loss_lowp))

    assert jnp.allclose(loss_f32, ref, atol=1e-4, rtol=1e-4), (loss_f32, ref)
    assert jnp.allclose(loss_tiled, ref, atol=1e-4, rtol=1e-4), (loss_tiled, ref)
    assert jnp.allclose(loss_lowp, ref, atol=5e-2, rtol=5e-2), (loss_lowp, ref)

    print("KERNEL_OK")
</pallas_src>

<mosaic_0001>
module attributes {stable_mosaic.version = 11 : i64} {
  func.func @_para_loss_kernel(%arg0: i32, %arg1: i32, %arg2: memref<1x4x256xf32, #tpu.memory_space<vmem>>, %arg3: memref<1x4x256xf32, #tpu.memory_space<vmem>>, %arg4: memref<1x8x128xf32, #tpu.memory_space<vmem>>, %arg5: memref<1x4xf32, #tpu.memory_space<vmem>>, %arg6: memref<1x4xf32, #tpu.memory_space<vmem>>) attributes {dimension_semantics = [#tpu.dimension_semantics<parallel>, #tpu.dimension_semantics<arbitrary>], iteration_bounds = array<i64: 2, 1>, scalar_prefetch = 0 : i64, scratch_operands = 2 : i64, tpu.core_type = #tpu.core_type<tc>, window_params = [{transform_indices = @transform_0, window_bounds = array<i64: 1, 4, 256>}, {transform_indices = @transform_1, window_bounds = array<i64: 1, 4, 256>}, {transform_indices = @transform_2, window_bounds = array<i64: 1, 8, 128>}]} {
    %c0_i32 = arith.constant 0 : i32
    %0 = arith.cmpi eq, %arg1, %c0_i32 : i32
    %1 = arith.extui %0 : i1 to i32
    %c0_i32_0 = arith.constant 0 : i32
    %2 = arith.cmpi ne, %1, %c0_i32_0 : i32
    scf.if %2 {
      %cst_18 = arith.constant 0.000000e+00 : f32
      %20 = vector.broadcast %cst_18 : f32 to vector<1x4xf32>
      %c0_19 = arith.constant 0 : index
      %c0_20 = arith.constant 0 : index
      %21 = vector.load %arg5[%c0_19, %c0_20] : memref<1x4xf32, #tpu.memory_space<vmem>>, vector<1x4xf32>
      tpu.vector_store %arg5[%c0_19, %c0_20], %20 {strides = array<i32>} : memref<1x4xf32, #tpu.memory_space<vmem>>, vector<1x4xf32>,
      %cst_21 = arith.constant 0.000000e+00 : f32
      %22 = vector.broadcast %cst_21 : f32 to vector<1x4xf32>
      %c0_22 = arith.constant 0 : index
      %c0_23 = arith.constant 0 : index
      %23 = vector.load %arg6[%c0_22, %c0_23] : memref<1x4xf32, #tpu.memory_space<vmem>>, vector<1x4xf32>
      tpu.vector_store %arg6[%c0_22, %c0_23], %22 {strides = array<i32>} : memref<1x4xf32, #tpu.memory_space<vmem>>, vector<1x4xf32>,
    } else {
    }
    %c0 = arith.constant 0 : index
    %c0_1 = arith.constant 0 : index
    %c0_2 = arith.constant 0 : index
    %3 = vector.load %arg2[%c0, %c0_1, %c0_2] : memref<1x4x256xf32, #tpu.memory_space<vmem>>, vector<1x4x256xf32>
    %c0_3 = arith.constant 0 : index
    %c0_4 = arith.constant 0 : index
    %c0_5 = arith.constant 0 : index
    %4 = vector.load %arg3[%c0_3, %c0_4, %c0_5] : memref<1x4x256xf32, #tpu.memory_space<vmem>>, vector<1x4x256xf32>
    %cst = arith.constant dense<0.000000e+00> : vector<1x256xf32>
    %5 = vector.multi_reduction <add>, %4, %cst [1] : vector<1x4x256xf32> to vector<1x256xf32>
    %6 = vector.shape_cast %5 : vector<1x256xf32> to vector<1x1x256xf32>
    %c0_6 = arith.constant 0 : index
    %c0_7 = arith.constant 0 : index
    %7 = vector.load %arg5[%c0_6, %c0_7] : memref<1x4xf32, #tpu.memory_space<vmem>>, vector<1x4xf32>
    %8 = vector.broadcast %6 : vector<1x1x256xf32> to vector<1x4x256xf32>
    %9 = arith.mulf %3, %8 : vector<1x4x256xf32>
    %cst_8 = arith.constant dense<0.000000e+00> : vector<1x4xf32>
    %10 = vector.multi_reduction <add>, %9, %cst_8 [2] : vector<1x4x256xf32> to vector<1x4xf32>
    %11 = arith.addf %7, %10 : vector<1x4xf32>
    %c0_9 = arith.constant 0 : index
    %c0_10 = arith.constant 0 : index
    %12 = vector.load %arg5[%c0_9, %c0_10] : memref<1x4xf32, #tpu.memory_space<vmem>>, vector<1x4xf32>
    tpu.vector_store %arg5[%c0_9, %c0_10], %11 {strides = array<i32>} : memref<1x4xf32, #tpu.memory_space<vmem>>, vector<1x4xf32>,
    %c0_11 = arith.constant 0 : index
    %c0_12 = arith.constant 0 : index
    %13 = vector.load %arg6[%c0_11, %c0_12] : memref<1x4xf32, #tpu.memory_space<vmem>>, vector<1x4xf32>
    %cst_13 = arith.constant dense<0.000000e+00> : vector<1x4xf32>
    %14 = vector.multi_reduction <add>, %4, %cst_13 [2] : vector<1x4x256xf32> to vector<1x4xf32>
    %15 = arith.addf %13, %14 : vector<1x4xf32>
    %c0_14 = arith.constant 0 : index
    %c0_15 = arith.constant 0 : index
    %16 = vector.load %arg6[%c0_14, %c0_15] : memref<1x4xf32, #tpu.memory_space<vmem>>, vector<1x4xf32>
    tpu.vector_store %arg6[%c0_14, %c0_15], %15 {strides = array<i32>} : memref<1x4xf32, #tpu.memory_space<vmem>>, vector<1x4xf32>,
    %c0_i32_16 = arith.constant 0 : i32
    %17 = arith.cmpi eq, %arg1, %c0_i32_16 : i32
    %18 = arith.extui %17 : i1 to i32
    %c0_i32_17 = arith.constant 0 : i32
    %19 = arith.cmpi ne, %18, %c0_i32_17 : i32
    scf.if %19 {
      %c0_18 = arith.constant 0 : index
      %c0_19 = arith.constant 0 : index
      %20 = vector.load %arg5[%c0_18, %c0_19] : memref<1x4xf32, #tpu.memory_space<vmem>>, vector<1x4xf32>
      %c0_20 = arith.constant 0 : index
      %c0_21 = arith.constant 0 : index
      %21 = vector.load %arg6[%c0_20, %c0_21] : memref<1x4xf32, #tpu.memory_space<vmem>>, vector<1x4xf32>
      %22 = tpu.iota {dimensions = array<i32: 1>} : vector<1x4xi32>
      %cst_22 = arith.constant dense<0xFF800000> : vector<1xf32>
      %23 = vector.multi_reduction <maximumf>, %21, %cst_22 [1] : vector<1x4xf32> to vector<1xf32>
      %24 = vector.shape_cast %23 : vector<1xf32> to vector<1x1xf32>
      %25 = vector.broadcast %24 : vector<1x1xf32> to vector<1x4xf32>
      %26 = arith.cmpf oeq, %21, %25 : vector<1x4xf32>
      %c4_i32 = arith.constant 4 : i32
      %27 = vector.broadcast %c4_i32 : i32 to vector<1x4xi32>
      %28 = arith.select %26, %22, %27 : vector<1x4xi1>, vector<1x4xi32>
      %cst_23 = arith.constant dense<2147483647> : vector<1xi32>
      %29 = vector.multi_reduction <minsi>, %28, %cst_23 [1] : vector<1x4xi32> to vector<1xi32>
      %30 = vector.shape_cast %29 : vector<1xi32> to vector<1x1xi32>
      %31 = vector.broadcast %30 : vector<1x1xi32> to vector<1x4xi32>
      %32 = arith.cmpi eq, %22, %31 : vector<1x4xi32>
      %33 = arith.extui %32 : vector<1x4xi1> to vector<1x4xi32>
      %34 = arith.sitofp %33 : vector<1x4xi32> to vector<1x4xf32>
      %cst_24 = arith.constant dense<0xFF800000> : vector<1xf32>
      %35 = vector.multi_reduction <maximumf>, %20, %cst_24 [1] : vector<1x4xf32> to vector<1xf32>
      %36 = vector.shape_cast %35 : vector<1xf32> to vector<1x1xf32>
      %37 = vector.broadcast %36 : vector<1x1xf32> to vector<1x4xf32>
      %38 = arith.subf %20, %37 : vector<1x4xf32>
      %39 = math.exp %38 : vector<1x4xf32>
      %cst_25 = arith.constant dense<0.000000e+00> : vector<1xf32>
      %40 = vector.multi_reduction <add>, %39, %cst_25 [1] : vector<1x4xf32> to vector<1xf32>
      %41 = vector.shape_cast %40 : vector<1xf32> to vector<1x1xf32>
      %42 = math.log %41 : vector<1x1xf32>
      %43 = arith.addf %36, %42 : vector<1x1xf32>
      %44 = arith.mulf %20, %34 : vector<1x4xf32>
      %cst_26 = arith.constant dense<0.000000e+00> : vector<1xf32>
      %45 = vector.multi_reduction <add>, %44, %cst_26 [1] : vector<1x4xf32> to vector<1xf32>
      %46 = vector.shape_cast %45 : vector<1xf32> to vector<1x1xf32>
      %47 = arith.subf %43, %46 : vector<1x1xf32>
      %48 = vector.shape_cast %47 : vector<1x1xf32> to vector<1x1x1xf32>
      %cst_27 = arith.constant dense<0.000000e+00> : vector<1xf32>
      %49 = vector.multi_reduction <add>, %48, %cst_27 [1, 2] : vector<1x1x1xf32> to vector<1xf32>
      %50 = vector.shape_cast %49 : vector<1xf32> to vector<1x1x1xf32>
      %51 = vector.extract %50[0, 0, 0] : f32 from vector<1x1x1xf32>
      %52 = vector.broadcast %51 : f32 to vector<1x8x128xf32>
      %c0_28 = arith.constant 0 : index
      %c0_29 = arith.constant 0 : index
      %c0_30 = arith.constant 0 : index
      %53 = vector.load %arg4[%c0_28, %c0_29, %c0_30] : memref<1x8x128xf32, #tpu.memory_space<vmem>>, vector<1x8x128xf32>
      tpu.vector_store %arg4[%c0_28, %c0_29, %c0_30], %52 {strides = array<i32>} : memref<1x8x128xf32, #tpu.memory_space<vmem>>, vector<1x8x128xf32>,
    } else {
    }
    return
  }
  func.func @transform_0(%arg0: i32, %arg1: i32) -> (i32, i32, i32) {
    %c0_i32 = arith.constant 0 : i32
    %c0_i32_0 = arith.constant 0 : i32
    return %arg0, %c0_i32, %arg1 : i32, i32, i32
  }
  func.func @transform_1(%arg0: i32, %arg1: i32) -> (i32, i32, i32) {
    %c0_i32 = arith.constant 0 : i32
    %c0_i32_0 = arith.constant 0 : i32
    return %arg0, %c0_i32, %arg1 : i32, i32, i32
  }
  func.func @transform_2(%arg0: i32, %arg1: i32) -> (i32, i32, i32) {
    %c0_i32 = arith.constant 0 : i32
    %c0_i32_0 = arith.constant 0 : i32
    %c0_i32_1 = arith.constant 0 : i32
    return %arg0, %c0_i32, %c0_i32_0 : i32, i32, i32
  }
}

</mosaic_0001>

<bundles_post_ra>
// kernel: tpu_custom_call.1
= control target key start
LH: loop header
LB: loop body
LE: loop exit
PB: predicated region body
PF: predicated region fallthrough
CT: control target
= control target key end

     0   :  { %7 = vsyncpa [#allocation5], 0  ;;  %s1019_s0 = inlined_call_operand.hbm [shape: f32[2,4,256], index: 0, kind: input, shape index: {}]   ;;  %s1020_s1 = inlined_call_operand.hbm [shape: f32[2,4,256], index: 1, kind: input, shape index: {}]   ;;  %s1021_s2 = inlined_call_operand.hbm [shape: f32[2,8,128], index: 2, kind: output, shape index: {}]  }
   0x1   :  { %9 = vsyncpa [#allocation5 + $0x1], 0 }
   0x2   :  { %10 = vsyncpa [#allocation8], 0 }
   0x3   :  { %12 = vsyncpa [#allocation8 + $0x1], 0 }
   0x4   :  { %13 = vsyncpa [#allocation6], 0 }
   0x5   :  { %15 = vsyncpa [#allocation6 + $0x1], 0  ;;  %s831_s9 = smov 0   ;;  %s833_s10 = smov 0  }
   0x6   :  { %s835_s11 = smov 0   ;;  %s837_s12 = smov 0  }
   0x7   :  { %s839_s13 = smov 0   ;;  %s841_s14 = smov 0  }
   0x8 LB: > { %s568_s15 = sadd.s32 4294967295, %s808_s14   ;;  %s569_s16 = sadd.s32 4294967294, %s808_s14   ;;  %s808_s14 = sphi %s841_s14, %s21_s14   ;;  %s804_s13 = sphi %s839_s13, %s1033_s13   ;;  %s800_s12 = sphi %s837_s12, %s1032_s12   ;;  %s796_s11 = sphi %s835_s11, %s1031_s11   ;;  %s792_s10 = sphi %s833_s10, %s1030_s10   ;;  %s788_s9 = sphi %s831_s9, %s1029_s9  }
   0x9   : > { %s33_s17 = sadd.s32 1, %s804_s13  ;;  %s42_s18 = sadd.s32 1, %s796_s11 }
   0xa   : > { %p35_p0 = scmp.ge.s32.totalorder %s33_s17, 2  ;;  %p49_p1 = scmp.ne.s32.totalorder %s796_s11, %s792_s10 }
   0xb   : > { %p50_p2 = scmp.eq.s32.totalorder %s808_s14, 0  ;;  %p55_p3 = scmp.ne.s32.totalorder %s792_s10, %s788_s9 }
   0xc   : > { %s1035_s17 = smov (%p35_p0, %s33_s17), 0  ;;  %p56_p5 = scmp.eq.s32.totalorder %s568_s15, 0 }
   0xd   : > { %p872_p4 = por %p50_p2, %p49_p1  ;;  %s37_s20 = ssub.s32 %s804_s13, %s1035_s17 }
   0xe   : > { %p107_p6 = scmp.eq.s32.totalorder %s568_s15, 1  ;;  %p40_p7 = scmp.eq.s32.totalorder %s37_s20, 0 }
   0xf   : > { %p878_p8 = por %p56_p5, %p55_p3  ;;  %p113_p10 = scmp.eq.s32.totalorder %s569_s16, 1 }
  0x10   : > { %p882_p9 = por %p107_p6, %p49_p1  ;;  %p608_p13 = scmp.lt.s32.totalorder %s808_s14, 2 }
  0x11   : > { %s887_s23 = scalar_select %p40_p7, %s796_s11, %s42_s18  }
  0x12   : > { %p889_p11 = por %p113_p10, %p55_p3  ;;  %s896_s25 = sand.u32 1, %s796_s11  }
  0x13   : > { %s572_s26 = sshll.u32 %s896_s25, 3  ;;  %s587_s27 = sshll.u32 %s804_s13, 7 }
  0x14   : > { %s145_s30 = scalar_lea.hbm %s1019_s0, %s587_s27  ;;  %s137_s3 = scalar_lea.vmem [#allocation4], %s572_s26 }
  0x15   : > { %s147_s4 = sshll.u32 %s137_s3, 4  ;;  %p905_p0 = pnand %p608_p13, %p872_p4  ;;  %s148_s4 = int_to_ptr.vmem [resolvable:$true] %s147_s4 }
  0x16   : > { %p578_p1 = scmp.ge.s32.totalorder %s808_s14, 1  ;;  %p173_p2 = scmp.lt.s32.totalorder %s808_s14, 3 }
  0x17   : > { %s134_s6 = scalar_lea.sflag [#allocation5], %s896_s25  ;;  %p670_p3 = pneg %p905_p0 }
  0x18   : > { %s681_s7 = scalar_lea.vmem %s148_s4, 128  ;;  %s810_s8 = smov [#allocation4]  }
  0x19   : > { %p682_p5 = scmp.ne.s32.totalorder %s148_s4, %s681_s7  ;;  %s686_s15 = sshll.u32 %s810_s8, 4  ;;  %s687_s15 = int_to_ptr.vmem [resolvable:$false] %s686_s15 }
  0x1a   : > { %s688_s16 = scalar_lea.vmem %s687_s15, 256  ;;  %p689_p4 = scmp.lt.s32.totalorder %s148_s4, %s687_s15 }
  0x1b   : > { %p684_p6 = pnand %p682_p5, %p670_p3  ;;  %p690_p10 = scmp.lt.s32.totalorder %s688_s16, %s681_s7 }
  0x1d   : > { %p685_p7 = pneg %p684_p6  ;;  %p691_p13 = por %p690_p10, %p689_p4 }
  0x1f   : > { %p692_p12 = pnand %p691_p13, %p685_p7 }
  0x21   : > { %695 = shalt.err (!%p692_p12)
}
  0x22   : > { %600 = dma.hbm_to_vmem [thread:$0]  (!%p905_p0), %s145_s30, 128, %s148_s4, %s134_s6  }
  0x23   : > { %p923_p5 = pnand %p578_p1, %p173_p2  ;;  %s166_s28 = scalar_lea.hbm %s1020_s1, %s587_s27 }
  0x24   : > { %s158_s29 = scalar_lea.vmem [#allocation7], %s572_s26  ;;  %s155_s7 = scalar_lea.sflag [#allocation8], %s896_s25 }
  0x25   : > { %s168_s3 = sshll.u32 %s158_s29, 4  ;;  %s811_s30 = smov [#allocation7]   ;;  %s169_s3 = int_to_ptr.vmem [resolvable:$true] %s168_s3 }
  0x26   : > { %s709_s8 = scalar_lea.vmem %s169_s3, 128  ;;  %s714_s4 = sshll.u32 %s811_s30, 4  ;;  %s715_s4 = int_to_ptr.vmem [resolvable:$false] %s714_s4 }
  0x27   : > { %p710_p12 = scmp.ne.s32.totalorder %s169_s3, %s709_s8  ;;  %s716_s6 = scalar_lea.vmem %s715_s4, 256 }
  0x28   : > { %p717_p1 = scmp.lt.s32.totalorder %s169_s3, %s715_s4  ;;  %p718_p2 = scmp.lt.s32.totalorder %s716_s6, %s709_s8 }
  0x29   : > { %p712_p6 = pnand %p710_p12, %p670_p3 }
  0x2a   : > { %p719_p4 = por %p718_p2, %p717_p1 }
  0x2b   : > { %p713_p7 = pneg %p712_p6 }
  0x2d   : > { %p720_p10 = pnand %p719_p4, %p713_p7 }
  0x2f   : > { %723 = shalt.err (!%p720_p10)
}
  0x30   : > { %603 = dma.hbm_to_vmem [thread:$0]  (!%p905_p0), %s166_s28, 128, %s169_s3, %s155_s7  }
  0x31   : > { %177 = sbr.rel (%p923_p5) target bundleno = 988 (0x3dc), region = 28  ;;  %s939_s25 = sand.u32 (!%p923_p5), 1, %s792_s10  }
  0x32   : > { %s942_s26 = sshll.u32 (!%p923_p5), %s939_s25, 3  ;;  %s180_s27 = scalar_lea.sflag (!%p923_p5), [#allocation5], %s939_s25 }
  0x33   : > { %s183_s15 = scalar_lea.vmem (!%p923_p5), [#allocation4], %s942_s26 }
  0x36   : > { %775 = dma.done.wait (%p878_p8), %s180_s27, 128  }
  0x37   : > { %777 = vsyncadd (%p878_p8), %s180_s27, 4294967168  ;;  %s189_s5 = scalar_lea.sflag [#allocation8], %s939_s25  ;;  %s192_s16 = scalar_lea.vmem [#allocation7], %s942_s26 }
  0x38   : > { %779 = dma.done.wait (%p878_p8), %s189_s5, 128  }
  0x39   : > { %781 = vsyncadd (%p878_p8), %s189_s5, 4294967168  ;;  %vm232_vm0 = vcmask 1043456   ;;  %v228_v0 = vld [vmem:[%s192_s16] sm:$0xff]  ;;  %v812_v13 = vmov 0   ;;  %vm224_vm1 = vcmask 24576   ;;  %v227_v18 = vld [vmem:[%s183_s15] sm:$0xff]  ;;  %v262_v26 = vlaneseq }
  0x3a   : > { %v230_v1 = vcombine.high %v228_v0, %v228_v0  ;;  %v233_v2 = vsel %vm232_vm0, %v228_v0, 0.0  ;;  %661 = vset.pattern.permute.xlu0 %v812_v13  ;;  %662 = vset.pattern.permute.xlu1 %v812_v13  ;;  %v813_v19 = vmov 0.0   ;;  %v814_v27 = vmov 1966171168   ;;  %s217_s21 = scalar_lea.vmem [#allocation9], %s942_s26  ;;  %s584_s19 = sshll.u32 %s800_s12, 7 }
  0x3b   : > { %v234_v5 = vrot.slane %v233_v2, 4  ;;  %226 = vst.msk [vmem:[#allocation3] sm:$0x1] %vm224_vm1, %v813_v19  ;;  %225 = vst.msk [vmem:[#allocation2] sm:$0x1] %vm224_vm1, %v813_v19  ;;  %v281_v28 = vunpack.c.l.s4 %v814_v27  ;;  %v263_v29 = vshrl.u32 %v262_v26, 7  ;;  %s459_s3 = scalar_lea.hbm %s1021_s2, %s584_s19 }
  0x3c   : > { %v240_v3 = vsel %vm232_vm0, %v230_v1, 0.0  ;;  %v306_v57 = vand.u32 127, %v262_v26  ;;  %s461_s18 = sshll.u32 %s217_s21, 4  ;;  %s448_s7 = scalar_lea.sflag [#allocation6], %s939_s25  ;;  %s974_s18 = int_to_ptr.vmem [resolvable:$true] %s461_s18 }
  0x3d   : > { %v330_v4 = vadd.f32 %v240_v3, %v233_v2  ;;  %v241_v6 = vrot.slane %v240_v3, 4  ;;  %v235_v7 = vadd.f32 %v234_v5, %v233_v2  ;;  %v282_v30 = vunpack.c.0.s8 %v281_v28  ;;  %s724_s8 = scalar_lea.vmem %s974_s18, 128  ;;  %s815_s30 = smov [#allocation9]  }
  0x3e   : > { %v264_v31 = vsub.s32 0, %v263_v29  ;;  %v268_v32 = vsub.s32 1, %v263_v29  ;;  %v272_v33 = vsub.s32 2, %v263_v29  ;;  %v276_v34 = vsub.s32 3, %v263_v29  ;;  %p725_p8 = scmp.ne.s32.totalorder %s974_s18, %s724_s8  ;;  %s728_s12 = sshll.u32 %s815_s30, 4  ;;  %s729_s12 = int_to_ptr.vmem [resolvable:$false] %s728_s12 }
  0x3f   : > { %331 = vadd.xlane.f32.xlu0 %v330_v4  ;;  %v242_v8 = vadd.f32 %v241_v6, %v240_v3  ;;  %v236_v9 = vrot.slane %v235_v7, 2  ;;  %v285_v35 = vsub.s32 %v282_v30, %v263_v29  ;;  %v309_v58 = vsub.s32 %v306_v57, %v263_v29  ;;  %s730_s4 = scalar_lea.vmem %s729_s12, 256  ;;  %p731_p13 = scmp.lt.s32.totalorder %s974_s18, %s729_s12 }
  0x40   : > { %p726_p0 = pnand %p725_p8, %p882_p9  ;;  %p732_p5 = scmp.lt.s32.totalorder %s730_s4, %s724_s8 }
  0x41   : > { %v243_v10 = vrot.slane %v242_v8, 2  ;;  %v237_v11 = vadd.f32 %v236_v9, %v235_v7 }
  0x42   : > { %v329_v62 = vld [vmem:[#allocation3] sm:$0x1]  ;;  %p727_p3 = pneg %p726_p0  ;;  %p733_p12 = por %p732_p5, %p731_p13 }
  0x43   : > { %v244_v12 = vadd.f32 %v243_v10, %v242_v8  ;;  %v238_v14 = vrot.slane %v237_v11, 1 }
  0x44   : > { %p734_p6 = pnand %p733_p12, %p727_p3 }
  0x45   : > { %v245_v15 = vrot.slane %v244_v12, 1  ;;  %v239_v16 = vadd.f32 %v238_v14, %v237_v11 }
  0x47   : > { %v246_v17 = vadd.f32 %v245_v15, %v244_v12  ;;  %v247_v12 = vld [vmem:[#allocation2] sm:$0x1] }
  0x49   : > { %v250_v20 = vcombine.low %v239_v16, %v246_v17 }
  0x4b   : > { %v252_v21 = vmul.f32 %v250_v20, %v227_v18 }
  0x4d   : > { %v254_v22 = vcombine.high %v252_v21, %v252_v21  ;;  %v256_v23 = vsel %vm232_vm0, %v252_v21, 0.0 }
  0x4f   : > { %v257_v24 = vsel %vm232_vm0, %v254_v22, 0.0 }
  0x50   : > { %v258_v25 = vadd.f32 %v257_v24, %v256_v23 }
  0x52   : > { %259 = vadd.xlane.f32.xlu1 %v258_v25 }
  0xc8   : > { %v332_v36 = vpop.xlane.xlu0 %331 }
  0xc9   : > { %v337_v37 = vrot.slane %v332_v36, %v264_v31  ;;  %v341_v38 = vrot.slane %v332_v36, %v268_v32  ;;  %v345_v39 = vrot.slane %v332_v36, %v272_v33  ;;  %v349_v40 = vrot.slane %v332_v36, %v276_v34 }
  0xcb   : > { %v350_v41 = vcombine.low %v337_v37, %v341_v38  ;;  %v351_v42 = vcombine.low %v345_v39, %v349_v40 }
  0xcd   : > { %v358_v43 = vrot.slane %v350_v41, %v285_v35  ;;  %v365_v44 = vrot.slane %v351_v42, %v285_v35 }
  0xcf   : > { %v366_v45 = vcombine.low %v358_v43, %v365_v44 }
  0xd1   : > { %v373_v46 = vrot.slane %v366_v45, %v285_v35 }
  0xd3   : > { %375 = vperm.xlu0 %661, %v373_v46  }
  0xdb   : > { %v260_v47 = vpop.xlane.xlu1 %259 }
  0xdc   : > { %v265_v48 = vrot.slane %v260_v47, %v264_v31  ;;  %v269_v49 = vrot.slane %v260_v47, %v268_v32  ;;  %v273_v50 = vrot.slane %v260_v47, %v272_v33  ;;  %v277_v51 = vrot.slane %v260_v47, %v276_v34 }
  0xde   : > { %v278_v52 = vcombine.low %v265_v48, %v269_v49  ;;  %v279_v53 = vcombine.low %v273_v50, %v277_v51 }
  0xe0   : > { %v286_v54 = vrot.slane %v278_v52, %v285_v35  ;;  %v293_v55 = vrot.slane %v279_v53, %v285_v35 }
  0xe2   : > { %v294_v56 = vcombine.low %v286_v54, %v293_v55 }
  0xe4   : > { %v301_v3 = vrot.slane %v294_v56, %v285_v35 }
 0x14e   : > { %v376_v59 = vpop.permute.xlu0 %375 }
 0x14f   : > { %v380_v60 = vrot.slane %v376_v59, %v309_v58 }
 0x151   : > { %v387_v61 = vrot.slane %v380_v60, %v285_v35 }
 0x153   : > { %v394_v63 = vrot.slane %v387_v61, %v285_v35 }
 0x155   : > { %v396_v0 = vadd.f32 %v394_v63, %v329_v62 }
 0x157   : > { %397 = vst.msk [vmem:[#allocation3] sm:$0x1] %vm224_vm1, %v396_v0 }
 0x15e   : > { %v402_v1 = vld [vmem:[#allocation3] sm:$0x1] }
 0x15f   : > { %v403_v2 = vsel %vm224_vm1, %v402_v1, -inf }
 0x160   : > { %404 = vmax.xlane.f32.xlu1 %v403_v2 }
 0x171   : > { %303 = vperm.xlu1 %662, %v301_v3  }
 0x1e9   : > { %v405_v4 = vpop.xlane.xlu1 %404 }
 0x1ea   : > { %vm406_vm2 = vcmp.eq.f32.partialorder %v402_v1, %v405_v4 }
 0x1eb   : > { %v407_v5 = vsel %vm406_vm2, %v306_v57, 4 }
 0x1ec   : > { %v408_v6 = vsel %vm224_vm1, %v407_v5, 2147483647 }
 0x1ed   : > { %v304_v7 = vpop.permute.xlu1 %303  ;;  %v410_v8 = vshra.s32 %v408_v6, 16  ;;  %v409_v17 = vand.u32 65535, %v408_v6 }
 0x1ee   : > { %v310_v9 = vrot.slane %v304_v7, %v309_v58 }
 0x1ef   : > { %v412_v10 = vcvt.s32.f32 %v410_v8  ;;  %v411_v20 = vcvt.s32.f32 %v409_v17 }
 0x1f0   : > { %v317_v11 = vrot.slane %v310_v9, %v285_v35 }
 0x1f1   : > { %413 = vmin.xlane.f32.xlu1 %v412_v10 }
 0x1f2   : > { %v324_v13 = vrot.slane %v317_v11, %v285_v35 }
 0x1f4   : > { %v326_v14 = vadd.f32 %v324_v13, %v247_v12 }
 0x1f6   : > { %328 = vst.msk [vmem:[#allocation2] sm:$0x1] %vm224_vm1, %v326_v14 }
 0x1fd   : > { %v401_v15 = vld [vmem:[#allocation2] sm:$0x1] }
 0x1fe   : > { %v426_v16 = vsel %vm224_vm1, %v401_v15, -inf }
 0x1ff   : > { %427 = vmax.xlane.f32.xlu0 %v426_v16 }
 0x27a   : > { %v414_v18 = vpop.xlane.xlu1 %413 }
 0x27b   : > { %vm415_vm3 = vcmp.eq.f32.partialorder %v412_v10, %v414_v18  ;;  %v420_v27 = vcvt.f32.s32 %v414_v18 }
 0x27c   : > { %v416_v21 = vsel %vm415_vm3, %v411_v20, inf }
 0x27d   : > { %417 = vmin.xlane.f32.xlu1 %v416_v21  ;;  %v421_v29 = vshll.u32 %v420_v27, 16 }
 0x288   : > { %v428_v22 = vpop.xlane.xlu0 %427 }
 0x289   : > { %v429_v23 = vsub.f32 %v401_v15, %v428_v22 }
 0x28b   : > { %v430_v24 = vmul.f32 1.442695, %v429_v23 }
 0x28d   : > { %664 = vpow2.f32 %v430_v24 }
 0x29a   : > { %v665_v25 = vpop.eup %664 }
 0x29b   : > { %v432_v26 = vsel %vm224_vm1, %v665_v25, 0.0 }
 0x29c   : > { %433 = vadd.xlane.f32.xlu1 %v432_v26 }
 0x306   : > { %v418_v28 = vpop.xlane.xlu1 %417 }
 0x307   : > { %v419_v30 = vcvt.f32.s32 %v418_v28 }
 0x309   : > { %v422_v31 = vadd.s32 %v421_v29, %v419_v30 }
 0x30b   : > { %vm423_vm4 = vcmp.eq.s32.totalorder %v306_v57, %v422_v31 }
 0x30c   : > { %v582_v32 = vsel %vm423_vm4, 1.0, %v813_v19 }
 0x30d   : > { %v438_v33 = vmul.f32 %v582_v32, %v401_v15 }
 0x30f   : > { %v439_v34 = vsel %vm224_vm1, %v438_v33, 0.0 }
 0x310   : > { %440 = vadd.xlane.f32.xlu1 %v439_v34 }
 0x325   : > { %v434_v35 = vpop.xlane.xlu1 %433 }
 0x326   : > { %666 = vlog2.f32 %v434_v35 }
 0x333   : > { %v667_v36 = vpop.eup %666 }
 0x334   : > { %v436_v37 = vmul.f32 0.6931472, %v667_v36 }
 0x336   : > { %v437_v38 = vadd.f32 %v436_v37, %v428_v22 }
 0x399   : > { %v441_v39 = vpop.xlane.xlu1 %440 }
 0x39a   : > { %v442_v40 = vsub.f32 %v437_v38, %v441_v39 }
 0x39c   : > { %589 = vpush %v442_v40 }
 0x3cd   : > { %s590_s20 = spop %589 }
 0x3ce   : > { %v445_v19 = vstv %s590_s20 }
 0x3cf   : > { %446 = vst [vmem:[%s217_s21] sm:$0xff] %v445_v19 }
 0x3d0   : > { %737 = shalt.err (!%p734_p6)
}
 0x3d1   : > { %s738_s6 = scalar_lea.hbm %s459_s3, 128  ;;  %s742_s27 = scalar_lea.hbm %s1021_s2, 256 }
 0x3d2   : > { %p739_p7 = scmp.ne.s32.totalorder %s459_s3, %s738_s6  ;;  %p743_p4 = scmp.lt.s32.totalorder %s459_s3, %s1021_s2 }
 0x3d3   : > { %p744_p10 = scmp.lt.s32.totalorder %s742_s27, %s738_s6 }
 0x3d4   : > { %p740_p1 = pnand %p739_p7, %p882_p9 }
 0x3d5   : > { %p745_p8 = por %p744_p10, %p743_p4 }
 0x3d6   : > { %p741_p2 = pneg %p740_p1 }
 0x3d8   : > { %p746_p0 = pnand %p745_p8, %p741_p2 }
 0x3da   : > { %749 = shalt.err (!%p746_p0)
}
 0x3db   : > { %595 = dma.vmem_to_hbm [thread:$0]  (%p882_p9), %s974_s18, 128, %s459_s3, %s448_s7  }
 0x3dc PF: > { %s473_s16 = sand.u32 1, %s788_s9   ;;  %p1028_p3 = scmp.ge.s32.totalorder %s808_s14, 2 }
 0x3dd   : > { %s474_s21 = scalar_lea.sflag [#allocation6], %s473_s16 }
 0x3de   : > { %p605_p13 = pnand %p1028_p3, %p889_p11 }
 0x3e0   : > { %p606_p5 = pneg %p605_p13 }
 0x3e2   : > { %783 = dma.done.wait (%p606_p5), %s474_s21, 128  }
 0x3e3   : > { %785 = vsyncadd (%p606_p5), %s474_s21, 4294967168  ;;  %s21_s14 = sadd.s32 1, %s808_s14   ;;  %s1029_s9 = smov %s792_s10 }
 0x3e4   : > { %p18_p12 = scmp.ge.s32.totalorder %s21_s14, 4   ;;  %s1030_s10 = smov %s796_s11 }
 0x3e5   : > { %s1031_s11 = smov %s887_s23  ;;  %s1032_s12 = smov %s804_s13 }
 0x3e6   : > { %s1033_s13 = smov %s1035_s17  ;;  %20 = sbr.rel (!%p18_p12) target bundleno = 8 (0x8), region = 94 }
 0x3eb   :  { %479 = vsyncpa [#allocation5], 1 }
 0x3ec   :  { %481 = vsyncpa [#allocation5 + $0x1], 1 }
 0x3ed   :  { %482 = vsyncpa [#allocation8], 1 }
 0x3ee   :  { %484 = vsyncpa [#allocation8 + $0x1], 1 }
 0x3ef   :  { %485 = vsyncpa [#allocation6], 1 }
 0x3f0   :  { %487 = vsyncpa [#allocation6 + $0x1], 1 }

</bundles_post_ra>
